<compile_context>
chip_gen: v6e
topology: v6e:2x2x1
jax: 0.10.0
libtpu: 0.0.40
codegen_flags: <defaults>
</compile_context>

<pallas_src>
import functools

import jax
import jax.numpy as jnp
import numpy as np
from jax.experimental import pallas as pl
from jax.experimental.pallas import tpu as pltpu


def _round_up(x: int, m: int) -> int:
    return (x + m - 1) // m * m


def _grad_matrix(n: int) -> np.ndarray:
    """G (n,n) with G @ x == gradient(x): spacing-1, edge_order-1 (matches
    torch.gradient / jnp.gradient: one-sided at edges, central interior)."""
    if n < 2:
        raise ValueError("spatial dims must be >= 2 for gradient")
    g = np.zeros((n, n), np.float64)
    g[0, 0], g[0, 1] = -1.0, 1.0
    g[n - 1, n - 2], g[n - 1, n - 1] = -1.0, 1.0
    for i in range(1, n - 1):
        g[i, i - 1], g[i, i + 1] = -0.5, 0.5
    return g


def _laplacian_stencil_t(h: int, w: int) -> jax.Array:
    """L.T of shape (h*w, h*w) such that, for a row-major flattened slice x,
    x_flat @ L.T == (grad_h(grad_h(x)) + grad_w(grad_w(x))).flatten().
    All entries are exact dyadic rationals (exact in f32 and bf16)."""
    dh = _grad_matrix(h)
    dh = dh @ dh                      # second difference along H
    dw = _grad_matrix(w)
    dw = dw @ dw                      # second difference along W
    lap = np.kron(dh, np.eye(w)) + np.kron(np.eye(h), dw)
    return jnp.asarray(lap.T, dtype=jnp.float32)


def _gl2_kernel(lt_ref, u_ref, psi_ref, out_ref, *, inv_eps2, block_rows, total_rows):
    # (bsz, HW) lane-dense tiles; cast per-tile (inputs stay native dtype in HBM).
    u = u_ref[...].astype(jnp.float32)
    psi = psi_ref[...].astype(jnp.float32)

    # Ragged tail: rows past total_rows in the last block hold unspecified data.
    # Zero them before the compute (select, so garbage/NaN never propagates).
    # Statically skipped when M divides evenly into blocks.
    if total_rows % block_rows != 0:
        rows_left = total_rows - pl.program_id(0) * block_rows
        valid = jax.lax.broadcasted_iota(jnp.int32, u.shape, 0) < rows_left
        u = jnp.where(valid, u, 0.0)
        psi = jnp.where(valid, psi, 0.0)

    # "Laplacian" of every slice in the block as ONE MXU matmul against the
    # precomputed Kronecker stencil (256-wide contraction for 16x16 slices).
    # Default precision: stencil entries are exact; bf16 truncation of u
    # averages out in the final mean (verified vs. the pure-JAX reference).
    lap = jnp.dot(u, lt_ref[...], preferred_element_type=jnp.float32)

    t = lap + inv_eps2 * (1.0 - psi * psi) * psi     # pure VPU, 100% lane-occupied
    sq = t * t

    # Exactly one cross-lane/sublane reduction per chunk; partial replicated
    # into a lane-dense (1, 8, 128) tile (unmasked full-vreg store).
    out_ref[...] = jnp.full(out_ref.shape, jnp.sum(sq), dtype=jnp.float32)


def gl2_loss(u, psi, epsilon=1.0, *, block_budget_bytes=16 * 1024 * 1024):
    """Pallas TPU implementation of GL2Loss.forward(u, psi). Returns scalar f32."""
    N, C, H, W = u.shape
    assert psi.shape == u.shape
    M = N * C
    HW = H * W

    # TODO(synk): for H*W > ~2048 the dense Kronecker stencil gets too large;
    # fall back to per-axis (H,H)/(W,W) stencils (batched (bsz*H,W)@(W,W)) there.
    if HW > 2048:
        raise NotImplementedError("flattened Kronecker-stencil path needs H*W <= 2048")

    # Trailing dims are contiguous -> these reshapes are free (no transpose).
    uf = u.reshape(M, HW)
    pf = psi.reshape(M, HW)

    lt = _laplacian_stencil_t(H, W)          # (HW, HW) f32

    # --- VMEM-aware block sizing (lane-padding aware) --------------------
    # Per block row:
    #   DMA side : 2 inputs x 2 pipeline buffers x roundup(HW,128) x itemsize
    #   in-kernel: ~4 f32 temporaries (u_f32, psi_f32, lap, t/sq chain)
    hw_pad = _round_up(HW, 128)
    itemsize = jnp.dtype(u.dtype).itemsize
    bytes_per_row = 2 * 2 * hw_pad * itemsize + 4 * hw_pad * 4
    bsz = max(1, block_budget_bytes // bytes_per_row)

    if M <= 8:
        bsz = M                               # full-dim block (always legal)
    else:
        bsz = min(bsz, M)
        bsz = max(8, (bsz // 8) * 8)          # sublane-aligned row blocks
        if M >= 32:
            # Keep >= 4 independent chunks so a v7x megacore can shard the
            # "parallel" grid axis across both TensorCores.
            bsz = min(bsz, _round_up(pl.cdiv(M, 4), 8))
    num_chunks = pl.cdiv(M, bsz)

    kernel = functools.partial(
        _gl2_kernel,
        inv_eps2=float(1.0 / (epsilon ** 2)),
        block_rows=bsz,
        total_rows=M,
    )

    partials = pl.pallas_call(
        kernel,
        out_shape=jax.ShapeDtypeStruct((num_chunks, 8, 128), jnp.float32),
        grid_spec=pltpu.PrefetchScalarGridSpec(
            num_scalar_prefetch=0,
            grid=(num_chunks,),
            in_specs=[
                pl.BlockSpec((HW, HW), lambda i: (0, 0)),   # Kron stencil (constant)
                pl.BlockSpec((bsz, HW), lambda i: (i, 0)),  # u rows
                pl.BlockSpec((bsz, HW), lambda i: (i, 0)),  # psi rows
            ],
            out_specs=pl.BlockSpec((1, 8, 128), lambda i: (i, 0, 0)),
        ),
        compiler_params=pltpu.CompilerParams(
            # Chunks are fully independent -> megacore sharding on v7x.
            dimension_semantics=("parallel",),
            # Real footprint (padded) <= ~18 MiB with the default budget;
            # 32 MiB is safe on v5e/v6e (128 MiB VMEM) and v7x (64 MiB).
            vmem_limit_bytes=32 * 1024 * 1024,
        ),
    )(lt, uf, pf)

    total = N * C * H * W
    return jnp.sum(partials[:, 0, 0]) * (1.0 / total)


def gl2_loss_ref(u, psi, epsilon=1.0):
    """Pure-JAX reference mirroring the intended PyTorch math."""
    grad_u_x = jnp.gradient(u, axis=2)
    grad_u_y = jnp.gradient(u, axis=3)
    laplacian_u = jnp.gradient(grad_u_x, axis=2) + jnp.gradient(grad_u_y, axis=3)
    psi_magnitude = jnp.abs(psi) ** 2
    gl2_term = laplacian_u + (1.0 / epsilon ** 2) * (1.0 - psi_magnitude) * psi
    return jnp.mean(gl2_term ** 2)


if __name__ == "__main__":
    key = jax.random.PRNGKey(0)

    # Primary check: the shape the module implies.
    k1, k2, k3, k4 = jax.random.split(key, 4)
    N, C, H, W = 2, 4, 16, 16
    u = jax.random.normal(k1, (N, C, H, W), dtype=jnp.float32)
    psi = jax.random.normal(k2, (N, C, H, W), dtype=jnp.float32)

    loss = gl2_loss(u, psi, epsilon=1.0)
    jax.block_until_ready(loss)
    ref = gl2_loss_ref(u, psi, epsilon=1.0)
    # Tolerance covers single-pass MXU rounding of u vs. the sequential
    # jnp.gradient reference; rounding errors average out in the mean.
    assert jnp.allclose(loss, ref, rtol=5e-3, atol=5e-3), (float(loss), float(ref))

    # Secondary check: M=9 (not a multiple of the 8-row block) exercises the
    # in-kernel ragged-tail mask that replaced the wrapper zero-pad concatenate.
    u2 = jax.random.normal(k3, (3, 3, 16, 16), dtype=jnp.float32)
    psi2 = jax.random.normal(k4, (3, 3, 16, 16), dtype=jnp.float32)
    loss2 = gl2_loss(u2, psi2, epsilon=0.7)
    jax.block_until_ready(loss2)
    ref2 = gl2_loss_ref(u2, psi2, epsilon=0.7)
    assert jnp.allclose(loss2, ref2, rtol=5e-3, atol=5e-3), (float(loss2), float(ref2))

    print("KERNEL_OK")
</pallas_src>

<mosaic_0001>
module attributes {stable_mosaic.version = 11 : i64} {
  func.func @_gl2_kernel(%arg0: i32, %arg1: memref<256x256xf32, #tpu.memory_space<vmem>>, %arg2: memref<8x256xf32, #tpu.memory_space<vmem>>, %arg3: memref<8x256xf32, #tpu.memory_space<vmem>>, %arg4: memref<1x8x128xf32, #tpu.memory_space<vmem>>) attributes {dimension_semantics = [#tpu.dimension_semantics<parallel>], iteration_bounds = array<i64: 1>, scalar_prefetch = 0 : i64, scratch_operands = 0 : i64, tpu.core_type = #tpu.core_type<tc>, window_params = [{pipeline_mode = #tpu.pipeline_mode<synchronous>, transform_indices = @transform_0, window_bounds = array<i64: 256, 256>}, {transform_indices = @transform_1, window_bounds = array<i64: 8, 256>}, {transform_indices = @transform_2, window_bounds = array<i64: 8, 256>}, {transform_indices = @transform_3, window_bounds = array<i64: 1, 8, 128>}]} {
    %c0 = arith.constant 0 : index
    %c0_0 = arith.constant 0 : index
    %0 = vector.load %arg2[%c0, %c0_0] : memref<8x256xf32, #tpu.memory_space<vmem>>, vector<8x256xf32>
    %c0_1 = arith.constant 0 : index
    %c0_2 = arith.constant 0 : index
    %1 = vector.load %arg3[%c0_1, %c0_2] : memref<8x256xf32, #tpu.memory_space<vmem>>, vector<8x256xf32>
    %c0_3 = arith.constant 0 : index
    %c0_4 = arith.constant 0 : index
    %2 = vector.load %arg1[%c0_3, %c0_4] : memref<256x256xf32, #tpu.memory_space<vmem>>, vector<256x256xf32>
    %cst = arith.constant dense<0.000000e+00> : vector<8x256xf32>
    %3 = tpu.matmul %0, %2, %cst {dimension_numbers = #tpu.dot_dimension_numbers<[1], [0], [0], [1], [0, 0, 1, 1], [], []>} : vector<8x256xf32>, vector<256x256xf32>, vector<8x256xf32> -> vector<8x256xf32>
    %4 = arith.mulf %1, %1 : vector<8x256xf32>
    %cst_5 = arith.constant 1.000000e+00 : f32
    %5 = vector.broadcast %cst_5 : f32 to vector<8x256xf32>
    %6 = arith.subf %5, %4 : vector<8x256xf32>
    %cst_6 = arith.constant 1.000000e+00 : f32
    %7 = vector.broadcast %cst_6 : f32 to vector<8x256xf32>
    %8 = arith.mulf %7, %6 : vector<8x256xf32>
    %9 = arith.mulf %8, %1 : vector<8x256xf32>
    %10 = arith.addf %3, %9 : vector<8x256xf32>
    %11 = arith.mulf %10, %10 : vector<8x256xf32>
    %12 = vector.shape_cast %11 : vector<8x256xf32> to vector<1x8x256xf32>
    %cst_7 = arith.constant dense<0.000000e+00> : vector<1xf32>
    %13 = vector.multi_reduction <add>, %12, %cst_7 [1, 2] : vector<1x8x256xf32> to vector<1xf32>
    %14 = vector.shape_cast %13 : vector<1xf32> to vector<1x1x1xf32>
    %15 = vector.extract %14[0, 0, 0] : f32 from vector<1x1x1xf32>
    %16 = vector.broadcast %15 : f32 to vector<1x8x128xf32>
    %c0_8 = arith.constant 0 : index
    %c0_9 = arith.constant 0 : index
    %c0_10 = arith.constant 0 : index
    %17 = vector.load %arg4[%c0_8, %c0_9, %c0_10] : memref<1x8x128xf32, #tpu.memory_space<vmem>>, vector<1x8x128xf32>
    tpu.vector_store %arg4[%c0_8, %c0_9, %c0_10], %16 {strides = array<i32>} : memref<1x8x128xf32, #tpu.memory_space<vmem>>, vector<1x8x128xf32>,
    return
  }
  func.func @transform_0(%arg0: i32) -> (i32, i32) {
    %c0_i32 = arith.constant 0 : i32
    %c0_i32_0 = arith.constant 0 : i32
    %c0_i32_1 = arith.constant 0 : i32
    return %c0_i32, %c0_i32_0 : i32, i32
  }
  func.func @transform_1(%arg0: i32) -> (i32, i32) {
    %c0_i32 = arith.constant 0 : i32
    %c0_i32_0 = arith.constant 0 : i32
    return %arg0, %c0_i32 : i32, i32
  }
  func.func @transform_2(%arg0: i32) -> (i32, i32) {
    %c0_i32 = arith.constant 0 : i32
    %c0_i32_0 = arith.constant 0 : i32
    return %arg0, %c0_i32 : i32, i32
  }
  func.func @transform_3(%arg0: i32) -> (i32, i32, i32) {
    %c0_i32 = arith.constant 0 : i32
    %c0_i32_0 = arith.constant 0 : i32
    %c0_i32_1 = arith.constant 0 : i32
    return %arg0, %c0_i32, %c0_i32_0 : i32, i32, i32
  }
}

</mosaic_0001>

<bundles_post_ra>
// kernel: tpu_custom_call.1
= control target key start
LH: loop header
LB: loop body
LE: loop exit
PB: predicated region body
PF: predicated region fallthrough
CT: control target
= control target key end

     0   :  { %8 = vsyncpa [#allocation3], 0  ;;  %s359_s0 = inlined_call_operand.hbm [shape: f32[256,256], index: 0, kind: input, shape index: {}]   ;;  %s360_s1 = inlined_call_operand.hbm [shape: f32[8,256], index: 1, kind: input, shape index: {}]   ;;  %s361_s2 = inlined_call_operand.hbm [shape: f32[8,256], index: 2, kind: input, shape index: {}]   ;;  %s362_s3 = inlined_call_operand.hbm [shape: f32[1,8,128], index: 3, kind: output, shape index: {}]  }
   0x1   :  { %9 = vsyncpa [#allocation6], 0 }
   0x2   :  { %10 = vsyncpa [#allocation4], 0  ;;  %s321_s12 = smov [#allocation5]   ;;  %s322_s14 = smov [#allocation2]  }
   0x3   :  { %s29_s13 = sshll.u32 %s321_s12, 4  ;;  %s16_s15 = sshll.u32 %s322_s14, 4  ;;  %s30_s13 = int_to_ptr.vmem [resolvable:$true] %s29_s13  ;;  %s17_s15 = int_to_ptr.vmem [resolvable:$true] %s16_s15 }
   0x4   :  { %s243_s16 = scalar_lea.vmem %s30_s13, 256  ;;  %p248_p1 = scmp.lt.s32.totalorder %s30_s13, %s30_s13 }
   0x5   :  { %p244_p0 = scmp.ne.s32.totalorder %s30_s13, %s243_s16  ;;  %p249_p2 = scmp.lt.s32.totalorder %s243_s16, %s243_s16 }
   0x7   :  { %p250_p3 = por %p249_p2, %p248_p1 }
   0x9   :  { %p251_p4 = pnand %p250_p3, %p244_p0 }
   0xb   :  { %254 = shalt.err (!%p251_p4)
}
   0xc   :  { %32 = dma.hbm_to_vmem [thread:$0]  %s360_s1, 256, %s30_s13, [#allocation6]  }
   0xd   :  { %s263_s19 = scalar_lea.vmem %s17_s15, 8192  ;;  %p268_p6 = scmp.lt.s32.totalorder %s17_s15, %s17_s15 }
   0xe   :  { %p264_p5 = scmp.ne.s32.totalorder %s17_s15, %s263_s19  ;;  %p269_p7 = scmp.lt.s32.totalorder %s263_s19, %s263_s19 }
  0x10   :  { %p270_p8 = por %p269_p7, %p268_p6 }
  0x12   :  { %p271_p9 = pnand %p270_p8, %p264_p5 }
  0x14   :  { %274 = shalt.err (!%p271_p9)
}
  0x15   :  { %s323_s20 = smov 256   ;;  %s324_s21 = smov 16  }
  0x16   :  { %22 = dma.hbm_to_vmem [thread:$0]  %s359_s0, 8192, %s17_s15, [#allocation3], %s323_s20, %s323_s20, %s324_s21  }
  0x17   :  { %s325_s24 = smov [#allocation7]  }
  0x18   :  { %s39_s25 = sshll.u32 %s325_s24, 4  ;;  %s40_s25 = int_to_ptr.vmem [resolvable:$true] %s39_s25 }
  0x19   :  { %s283_s26 = scalar_lea.vmem %s40_s25, 256  ;;  %p288_p11 = scmp.lt.s32.totalorder %s40_s25, %s40_s25 }
  0x1a   :  { %p284_p10 = scmp.ne.s32.totalorder %s40_s25, %s283_s26  ;;  %p289_p12 = scmp.lt.s32.totalorder %s283_s26, %s283_s26 }
  0x1c   :  { %p290_p13 = por %p289_p12, %p288_p11 }
  0x1e   :  { %p291_p0 = pnand %p290_p13, %p284_p10 }
  0x20   :  { %294 = shalt.err (!%p291_p0)
}
  0x21   :  { %42 = dma.hbm_to_vmem [thread:$0]  %s361_s2, 256, %s40_s25, [#allocation6]  }
  0x22   :  { %315 = dma.done.wait [#allocation3], 8192  }
  0x23   :  { %316 = vsyncadd [#allocation3], 4294959104 }
  0x24   :  { %317 = dma.done.wait [#allocation6], 512  }
  0x25   :  { %318 = vsyncadd [#allocation6], 4294966784  ;;  %v87_v0 = vld [vmem:[#allocation2 + $0xf8] sm:$0xff]  ;;  %v86_v1 = vld [vmem:[#allocation2 + $0xf0] sm:$0xff]  ;;  %s326_s0 = smov [#allocation8]  }
  0x26   :  { %v85_v2 = vld [vmem:[#allocation2 + $0xe8] sm:$0xff]  ;;  %126 = vmatprep.subr.mxu0 %v87_v0  ;;  %v84_v3 = vld [vmem:[#allocation2 + $0xe0] sm:$0xff]  ;;  %v83_v4 = vld [vmem:[#allocation2 + $0xd8] sm:$0xff]  ;;  %s217_s2 = sshll.u32 %s326_s0, 4  ;;  %s218_s2 = int_to_ptr.vmem [resolvable:$true] %s217_s2 }
  0x27   :  { %127 = vmatpush1.msra.mxu0 %v86_v1  ;;  %v82_v5 = vld [vmem:[#allocation2 + $0xd0] sm:$0xff]  ;;  %v81_v6 = vld [vmem:[#allocation2 + $0xc8] sm:$0xff]  ;;  %v80_v7 = vld [vmem:[#allocation2 + $0xc0] sm:$0xff]  ;;  %s295_s29 = scalar_lea.vmem %s218_s2, 128  ;;  %p300_p2 = scmp.lt.s32.totalorder %s218_s2, %s218_s2 }
  0x28   :  { %128 = vmatprep.subr.mxu0 %v85_v2  ;;  %v79_v8 = vld [vmem:[#allocation2 + $0xb8] sm:$0xff]  ;;  %v78_v9 = vld [vmem:[#allocation2 + $0xb0] sm:$0xff]  ;;  %v77_v10 = vld [vmem:[#allocation2 + $0xa8] sm:$0xff]  ;;  %p296_p1 = scmp.ne.s32.totalorder %s218_s2, %s295_s29  ;;  %p301_p3 = scmp.lt.s32.totalorder %s295_s29, %s295_s29 }
  0x29   :  { %129 = vmatpush1.msra.mxu0 %v84_v3  ;;  %v76_v11 = vld [vmem:[#allocation2 + $0xa0] sm:$0xff]  ;;  %v75_v12 = vld [vmem:[#allocation2 + $0x98] sm:$0xff]  ;;  %v74_v13 = vld [vmem:[#allocation2 + $0x90] sm:$0xff] }
  0x2a   :  { %130 = vmatprep.subr.mxu0 %v83_v4  ;;  %v73_v14 = vld [vmem:[#allocation2 + $0x88] sm:$0xff]  ;;  %v72_v15 = vld [vmem:[#allocation2 + $0x80] sm:$0xff]  ;;  %v71_v16 = vld [vmem:[#allocation2 + $0x78] sm:$0xff]  ;;  %p302_p4 = por %p301_p3, %p300_p2 }
  0x2b   :  { %131 = vmatpush1.msra.mxu0 %v82_v5  ;;  %v70_v17 = vld [vmem:[#allocation2 + $0x70] sm:$0xff]  ;;  %v69_v18 = vld [vmem:[#allocation2 + $0x68] sm:$0xff]  ;;  %v68_v19 = vld [vmem:[#allocation2 + $0x60] sm:$0xff] }
  0x2c   :  { %132 = vmatprep.subr.mxu0 %v81_v6  ;;  %v67_v20 = vld [vmem:[#allocation2 + $0x58] sm:$0xff]  ;;  %v66_v21 = vld [vmem:[#allocation2 + $0x50] sm:$0xff]  ;;  %v65_v22 = vld [vmem:[#allocation2 + $0x48] sm:$0xff]  ;;  %p303_p5 = pnand %p302_p4, %p296_p1 }
  0x2d   :  { %133 = vmatpush1.msra.mxu0 %v80_v7  ;;  %v64_v23 = vld [vmem:[#allocation2 + $0x40] sm:$0xff]  ;;  %v53_v24 = vld [vmem:[#allocation5 + $0x8] sm:$0xff]  ;;  %v63_v25 = vld [vmem:[#allocation2 + $0x38] sm:$0xff] }
  0x2e   :  { %134 = vmatprep.subr.mxu0 %v79_v8  ;;  %190 = vmatprep.mubr.f32.mxu0 %v53_v24  ;;  %v62_v26 = vld [vmem:[#allocation2 + $0x30] sm:$0xff]  ;;  %v61_v27 = vld [vmem:[#allocation2 + $0x28] sm:$0xff]  ;;  %v60_v28 = vld [vmem:[#allocation2 + $0x20] sm:$0xff] }
  0x2f   :  { %135 = vmatpush1.msra.mxu0 %v78_v9  ;;  %v59_v29 = vld [vmem:[#allocation2 + $0x18] sm:$0xff]  ;;  %v58_v30 = vld [vmem:[#allocation2 + $0x10] sm:$0xff]  ;;  %v57_v31 = vld [vmem:[#allocation2 + $0x8] sm:$0xff] }
  0x30   :  { %136 = vmatprep.subr.mxu0 %v77_v10  ;;  %v56_v32 = vld [vmem:[#allocation2] sm:$0xff]  ;;  %v119_v33 = vld [vmem:[#allocation2 + $0x1f8] sm:$0xff]  ;;  %v118_v34 = vld [vmem:[#allocation2 + $0x1f0] sm:$0xff] }
  0x31   :  { %137 = vmatpush1.msra.mxu0 %v76_v11  ;;  %v117_v35 = vld [vmem:[#allocation2 + $0x1e8] sm:$0xff]  ;;  %v116_v36 = vld [vmem:[#allocation2 + $0x1e0] sm:$0xff]  ;;  %v115_v37 = vld [vmem:[#allocation2 + $0x1d8] sm:$0xff] }
  0x32   :  { %138 = vmatprep.subr.mxu0 %v75_v12  ;;  %v114_v38 = vld [vmem:[#allocation2 + $0x1d0] sm:$0xff]  ;;  %v113_v39 = vld [vmem:[#allocation2 + $0x1c8] sm:$0xff]  ;;  %v112_v40 = vld [vmem:[#allocation2 + $0x1c0] sm:$0xff] }
  0x33   :  { %139 = vmatpush1.msra.mxu0 %v74_v13  ;;  %v111_v41 = vld [vmem:[#allocation2 + $0x1b8] sm:$0xff]  ;;  %v110_v42 = vld [vmem:[#allocation2 + $0x1b0] sm:$0xff]  ;;  %v109_v43 = vld [vmem:[#allocation2 + $0x1a8] sm:$0xff] }
  0x34   :  { %140 = vmatprep.subr.mxu0 %v73_v14  ;;  %v108_v44 = vld [vmem:[#allocation2 + $0x1a0] sm:$0xff]  ;;  %v107_v45 = vld [vmem:[#allocation2 + $0x198] sm:$0xff]  ;;  %v106_v46 = vld [vmem:[#allocation2 + $0x190] sm:$0xff] }
  0x35   :  { %141 = vmatpush1.msra.mxu0 %v72_v15  ;;  %v105_v47 = vld [vmem:[#allocation2 + $0x188] sm:$0xff]  ;;  %v104_v48 = vld [vmem:[#allocation2 + $0x180] sm:$0xff]  ;;  %v103_v49 = vld [vmem:[#allocation2 + $0x178] sm:$0xff] }
  0x36   :  { %142 = vmatprep.subr.mxu0 %v71_v16  ;;  %v102_v50 = vld [vmem:[#allocation2 + $0x170] sm:$0xff]  ;;  %v101_v51 = vld [vmem:[#allocation2 + $0x168] sm:$0xff]  ;;  %v100_v52 = vld [vmem:[#allocation2 + $0x160] sm:$0xff] }
  0x37   :  { %143 = vmatpush1.msra.mxu0 %v70_v17  ;;  %v99_v53 = vld [vmem:[#allocation2 + $0x158] sm:$0xff]  ;;  %v98_v54 = vld [vmem:[#allocation2 + $0x150] sm:$0xff]  ;;  %v97_v55 = vld [vmem:[#allocation2 + $0x148] sm:$0xff] }
  0x38   :  { %144 = vmatprep.subr.mxu0 %v69_v18  ;;  %v96_v56 = vld [vmem:[#allocation2 + $0x140] sm:$0xff]  ;;  %v95_v57 = vld [vmem:[#allocation2 + $0x138] sm:$0xff]  ;;  %v94_v58 = vld [vmem:[#allocation2 + $0x130] sm:$0xff] }
  0x39   :  { %145 = vmatpush1.msra.mxu0 %v68_v19  ;;  %v93_v59 = vld [vmem:[#allocation2 + $0x128] sm:$0xff]  ;;  %v92_v60 = vld [vmem:[#allocation2 + $0x120] sm:$0xff]  ;;  %v91_v61 = vld [vmem:[#allocation2 + $0x118] sm:$0xff] }
  0x3a   :  { %146 = vmatprep.subr.mxu0 %v67_v20  ;;  %v90_v62 = vld [vmem:[#allocation2 + $0x110] sm:$0xff]  ;;  %v89_v63 = vld [vmem:[#allocation2 + $0x108] sm:$0xff]  ;;  %v88_v0 = vld [vmem:[#allocation2 + $0x100] sm:$0xff] }
  0x3b   :  { %147 = vmatpush1.msra.mxu0 %v66_v21  ;;  %v52_v1 = vld [vmem:[#allocation5] sm:$0xff]  ;;  %v54_v2 = vld [vmem:[#allocation7] sm:$0xff]  ;;  %v55_v3 = vld [vmem:[#allocation7 + $0x8] sm:$0xff] }
  0x3c   :  { %148 = vmatprep.subr.mxu0 %v65_v22  ;;  %v120_v4 = vmul.f32 %v54_v2, %v54_v2  ;;  %v121_v5 = vmul.f32 %v55_v3, %v55_v3 }
  0x3d   :  { %149 = vmatpush1.msra.mxu0 %v64_v23 }
  0x3e   :  { %150 = vmatprep.subr.mxu0 %v63_v25  ;;  %v122_v6 = vsub.f32 1.0, %v120_v4  ;;  %v123_v7 = vsub.f32 1.0, %v121_v5 }
  0x3f   :  { %151 = vmatpush1.msra.mxu0 %v62_v26 }
  0x40   :  { %152 = vmatprep.subr.mxu0 %v61_v27  ;;  %v124_v8 = vmul.f32 %v122_v6, %v54_v2  ;;  %v125_v9 = vmul.f32 %v123_v7, %v55_v3 }
  0x41   :  { %153 = vmatpush1.msra.mxu0 %v60_v28 }
  0x42   :  { %154 = vmatprep.subr.mxu0 %v59_v29 }
  0x43   :  { %155 = vmatpush1.msra.mxu0 %v58_v30 }
  0x44   :  { %156 = vmatprep.subr.mxu0 %v57_v31 }
  0x45   :  { %157 = vmatpush1.msra.mxu0 %v56_v32 }
  0x46   :  { %158 = vmatprep.subr.mxu0 %v119_v33 }
  0x47   :  { %159 = vmatpush2.msra.mxu0 %v118_v34 }
  0x48   :  { %160 = vmatprep.subr.mxu0 %v117_v35 }
  0x49   :  { %161 = vmatpush2.msra.mxu0 %v116_v36 }
  0x4a   :  { %162 = vmatprep.subr.mxu0 %v115_v37 }
  0x4b   :  { %163 = vmatpush2.msra.mxu0 %v114_v38 }
  0x4c   :  { %164 = vmatprep.subr.mxu0 %v113_v39 }
  0x4d   :  { %165 = vmatpush2.msra.mxu0 %v112_v40 }
  0x4e   :  { %166 = vmatprep.subr.mxu0 %v111_v41 }
  0x4f   :  { %167 = vmatpush2.msra.mxu0 %v110_v42 }
  0x50   :  { %168 = vmatprep.subr.mxu0 %v109_v43 }
  0x51   :  { %169 = vmatpush2.msra.mxu0 %v108_v44 }
  0x52   :  { %170 = vmatprep.subr.mxu0 %v107_v45 }
  0x53   :  { %171 = vmatpush2.msra.mxu0 %v106_v46 }
  0x54   :  { %172 = vmatprep.subr.mxu0 %v105_v47 }
  0x55   :  { %173 = vmatpush2.msra.mxu0 %v104_v48 }
  0x56   :  { %174 = vmatprep.subr.mxu0 %v103_v49 }
  0x57   :  { %175 = vmatpush2.msra.mxu0 %v102_v50 }
  0x58   :  { %176 = vmatprep.subr.mxu0 %v101_v51 }
  0x59   :  { %177 = vmatpush2.msra.mxu0 %v100_v52 }
  0x5a   :  { %178 = vmatprep.subr.mxu0 %v99_v53 }
  0x5b   :  { %179 = vmatpush2.msra.mxu0 %v98_v54 }
  0x5c   :  { %180 = vmatprep.subr.mxu0 %v97_v55 }
  0x5d   :  { %181 = vmatpush2.msra.mxu0 %v96_v56 }
  0x5e   :  { %182 = vmatprep.subr.mxu0 %v95_v57 }
  0x5f   :  { %183 = vmatpush2.msra.mxu0 %v94_v58 }
  0x60   :  { %184 = vmatprep.subr.mxu0 %v93_v59 }
  0x61   :  { %185 = vmatpush2.msra.mxu0 %v92_v60 }
  0x62   :  { %186 = vmatprep.subr.mxu0 %v91_v61 }
  0x63   :  { %187 = vmatpush2.msra.mxu0 %v90_v62 }
  0x64   :  { %188 = vmatprep.subr.mxu0 %v89_v63 }
  0x65   :  { %189 = vmatpush2.msra.mxu0 %v88_v0 }
  0x66   :  { %191 = vmatmul.mubr.f32.vlgmr.msra.gmra.mxu0 %v52_v1 }
 0x126   :  { %v192_v10 = vpop.f32.mrf.mxu0 }
 0x127   :  { %v193_v11 = vadd.f32 %v192_v10, %v124_v8 }
 0x128   :  { %v194_v12 = vpop.f32.mrf.mxu0 }
 0x129   :  { %v195_v13 = vadd.f32 %v194_v12, %v125_v9  ;;  %v197_v14 = vmul.f32 %v193_v11, %v193_v11 }
 0x12b   :  { %v198_v15 = vmul.f32 %v195_v13, %v195_v13 }
 0x12d   :  { %v199_v16 = vadd.f32 %v198_v15, %v197_v14 }
 0x12f   :  { %200 = vadd.xlane.f32.xlu0 %v199_v16 }
 0x1b8   :  { %v201_v17 = vpop.xlane.xlu0 %200 }
 0x1b9   :  { %v202_v18 = vrot.slane %v201_v17, 4 }
 0x1bb   :  { %v203_v19 = vadd.f32 %v202_v18, %v201_v17 }
 0x1bd   :  { %v204_v20 = vrot.slane %v203_v19, 2 }
 0x1bf   :  { %v205_v21 = vadd.f32 %v204_v20, %v203_v19 }
 0x1c1   :  { %v206_v22 = vrot.slane %v205_v21, 1 }
 0x1c3   :  { %v207_v23 = vadd.f32 %v206_v22, %v205_v21 }
 0x1c5   :  { %227 = vpush %v207_v23 }
 0x1f6   :  { %s228_s28 = spop %227 }
 0x1f7   :  { %v209_v24 = vstv %s228_s28 }
 0x1f8   :  { %210 = vst [vmem:[#allocation8] sm:$0xff] %v209_v24 }
 0x1f9   :  { %306 = shalt.err (!%p303_p5)
}
 0x1fa   :  { %220 = dma.vmem_to_hbm [thread:$0]  %s218_s2, 128, %s362_s3, [#allocation4]  }
 0x1fb   :  { %319 = dma.done.wait [#allocation4], 128  }
 0x1fc   :  { %320 = vsyncadd [#allocation4], 4294967168 }
 0x1fd   :  { %224 = vsyncpa [#allocation3], 1 }
 0x1fe   :  { %225 = vsyncpa [#allocation6], 1 }
 0x1ff   :  { %226 = vsyncpa [#allocation4], 1 }

</bundles_post_ra>
